<compile_context>
chip_gen: v6e
topology: v6e:2x2x1
jax: 0.10.0
libtpu: 0.0.40
codegen_flags: <defaults>
</compile_context>

<pallas_src>
import functools

import jax
import jax.numpy as jnp
from jax.experimental import pallas as pl
from jax.experimental.pallas import tpu as pltpu

LANE = 128


def _round_up(x, m):
    return ((x + m - 1) // m) * m


def _choose_tiles(n):
    """Row / reduction tile sizes + padded node count (tm | n_pad, tk | n_pad)."""
    n_pad = _round_up(max(n, 1), LANE)
    if n_pad <= LANE:
        # Tiny graph: single tile (grid (1,1)).
        return n_pad, n_pad, n_pad
    if n_pad <= 1024:
        # Keep >= 2 row tiles so megacore (v7x: 2 TCs) sharding of the i-axis is balanced.
        n_pad = _round_up(n_pad, 2 * LANE)
        return n_pad, n_pad // 2, n_pad
    # Large-graph path: big tiles on the bandwidth-bound A stream.
    tm, tk = 512, 1024
    n_pad = _round_up(n_pad, tk)
    return n_pad, tm, tk


def _sage_layer_kernel(a_ref, x_ref, dinv_ref, wl_ref, wr_ref, b_ref,
                       out_ref, acc_ref, *, tm, tk, apply_relu):
    """One SAGEConv layer, tiled over (row-tile i ["parallel"], reduction-tile k ["arbitrary"]).

    a_ref    : (tm, tk) bf16     0/1 edge-count adjacency tile
    x_ref    : (n_pad, c_pad)    VMEM-resident node features (sliced for k-tile and i-tile)
    dinv_ref : (tm, 1) f32       1/in_degree (0 for isolated / padded rows)
    acc_ref  : (tm, c_pad) f32   running neighbor-sum accumulator (scratch)
    """
    i = pl.program_id(0)
    k = pl.program_id(1)

    # Neighbor aggregation: A[i-tile, k-tile] @ X[k-tile]  (bf16 in, f32 accumulate).
    x_k = x_ref[pl.ds(pl.multiple_of(k * tk, tk), tk), :]
    contrib = jnp.dot(a_ref[...], x_k, preferred_element_type=jnp.float32)

    @pl.when(k == 0)
    def _first():
        acc_ref[...] = contrib          # no separate zero-init store

    @pl.when(k > 0)
    def _accumulate():
        acc_ref[...] += contrib

    @pl.when(k == pl.num_programs(1) - 1)
    def _finalize():
        x_i = x_ref[pl.ds(pl.multiple_of(i * tm, tm), tm), :]
        mean = (acc_ref[...] * dinv_ref[...]).astype(jnp.bfloat16)   # exact f32 1/deg scaling
        y = (jnp.dot(mean, wl_ref[...], preferred_element_type=jnp.float32)
             + jnp.dot(x_i, wr_ref[...], preferred_element_type=jnp.float32)
             + b_ref[...])
        if apply_relu:
            y = jnp.maximum(y, 0.0)
        out_ref[...] = y.astype(out_ref.dtype)


def _a_tile_spec(tm, tk, n_k):
    index_map = lambda i, k: (i, k)
    if n_k >= 3:
        try:
            # Deeper prefetch on the one fast-moving, bandwidth-bound stream.
            return pl.BlockSpec((tm, tk), index_map, pipeline_mode=pl.Buffered(3))
        except TypeError:  # Pallas version without pipeline_mode kwarg
            pass
    return pl.BlockSpec((tm, tk), index_map)


def _sage_layer(a_cnt, x, deg_inv, w_l, w_r, b, *, out_dtype, apply_relu, tm, tk):
    """a_cnt: (n_pad, n_pad) bf16 0/1 counts, x: (n_pad, c_pad) bf16,
       deg_inv: (n_pad, 1) f32, w_l/w_r: (c_pad, out_pad) bf16, b: (1, out_pad) f32."""
    n_pad, c_pad = x.shape
    out_pad = w_l.shape[1]
    grid = (n_pad // tm, n_pad // tk)

    flops = 2 * n_pad * n_pad * c_pad + 2 * 2 * n_pad * c_pad * out_pad
    bytes_accessed = (a_cnt.size * a_cnt.dtype.itemsize
                      + x.size * x.dtype.itemsize
                      + deg_inv.size * deg_inv.dtype.itemsize
                      + (w_l.size + w_r.size) * w_l.dtype.itemsize
                      + b.size * b.dtype.itemsize
                      + n_pad * out_pad * jnp.dtype(out_dtype).itemsize)

    # VMEM working-set estimate (A triple-buffered, X double-buffered but resident, etc.).
    vmem_est = (3 * tm * tk * 2
                + 2 * n_pad * c_pad * 2
                + 2 * tm * 4
                + 2 * 2 * c_pad * out_pad * 2
                + 2 * out_pad * 4
                + 2 * tm * out_pad * 4
                + tm * c_pad * 4)
    # Safe on all gens: >= default scoped 32 MiB, <= 48 MiB (v7x physical is 64 MiB).
    vmem_limit = min(max(32 * 1024 * 1024, 2 * vmem_est), 48 * 1024 * 1024)

    kernel = functools.partial(_sage_layer_kernel, tm=tm, tk=tk, apply_relu=apply_relu)

    return pl.pallas_call(
        kernel,
        out_shape=jax.ShapeDtypeStruct((n_pad, out_pad), out_dtype),
        grid_spec=pltpu.PrefetchScalarGridSpec(
            num_scalar_prefetch=0,
            grid=grid,
            in_specs=[
                _a_tile_spec(tm, tk, grid[1]),                           # A tile (streamed)
                pl.BlockSpec((n_pad, c_pad), lambda i, k: (0, 0)),       # X (VMEM resident)
                pl.BlockSpec((tm, 1), lambda i, k: (i, 0)),              # deg_inv column
                pl.BlockSpec((c_pad, out_pad), lambda i, k: (0, 0)),     # W_l
                pl.BlockSpec((c_pad, out_pad), lambda i, k: (0, 0)),     # W_r
                pl.BlockSpec((1, out_pad), lambda i, k: (0, 0)),         # bias
            ],
            out_specs=pl.BlockSpec((tm, out_pad), lambda i, k: (i, 0)),
            scratch_shapes=[pltpu.VMEM((tm, c_pad), jnp.float32)],
        ),
        compiler_params=pltpu.CompilerParams(
            dimension_semantics=("parallel", "arbitrary"),
            vmem_limit_bytes=vmem_limit,
        ),
        cost_estimate=pl.CostEstimate(
            flops=flops, transcendentals=0, bytes_accessed=bytes_accessed),
    )(a_cnt, x, deg_inv, w_l, w_r, b)


def _pad_weight(w, c_pad, out_pad):
    c_in, c_out = w.shape
    return (jnp.zeros((c_pad, out_pad), jnp.float32)
            .at[:c_in, :c_out].set(w)).astype(jnp.bfloat16)


def _pad_bias(b, out_pad):
    b = jnp.asarray(b, jnp.float32).reshape(1, -1)
    return jnp.zeros((1, out_pad), jnp.float32).at[:, :b.shape[1]].set(b)


def graph_token_classifier(x, edge_index, params):
    """x: (N, C_in) float32 node features.
       edge_index: (2, E) int32, row 0 = source nodes, row 1 = target nodes."""
    n, in_c = x.shape
    hid_c = params["w1l"].shape[1]
    out_c = params["w2l"].shape[1]

    ci_pad = _round_up(in_c, LANE)
    h_pad = _round_up(hid_c, LANE)
    co_pad = _round_up(out_c, LANE)
    n_pad, tm, tk = _choose_tiles(n)

    # ---- glue (plain JAX): raw 0/1 adjacency counts + O(E) in-degree inverse ----
    src = edge_index[0].astype(jnp.int32)
    dst = edge_index[1].astype(jnp.int32)
    a_cnt = (jnp.zeros((n_pad, n_pad), jnp.float32)
             .at[dst, src].add(1.0)).astype(jnp.bfloat16)        # small counts exact in bf16
    deg = jnp.zeros((n_pad,), jnp.float32).at[dst].add(1.0)
    deg_inv = jnp.where(deg > 0.0, 1.0 / jnp.maximum(deg, 1.0), 0.0).reshape(n_pad, 1)

    # ---- pad node features & parameters to lane width ----
    x_p = jnp.zeros((n_pad, ci_pad), jnp.bfloat16).at[:n, :in_c].set(x.astype(jnp.bfloat16))
    w1l = _pad_weight(params["w1l"], ci_pad, h_pad)
    w1r = _pad_weight(params["w1r"], ci_pad, h_pad)
    b1 = _pad_bias(params["b1"], h_pad)
    w2l = _pad_weight(params["w2l"], h_pad, co_pad)
    w2r = _pad_weight(params["w2r"], h_pad, co_pad)
    b2 = _pad_bias(params["b2"], co_pad)

    # ---- SAGEConv1 + ReLU (dropout = identity in eval mode) ----
    h = _sage_layer(a_cnt, x_p, deg_inv, w1l, w1r, b1,
                    out_dtype=jnp.bfloat16, apply_relu=True, tm=tm, tk=tk)
    # ---- SAGEConv2 ----
    out = _sage_layer(a_cnt, h, deg_inv, w2l, w2r, b2,
                      out_dtype=jnp.float32, apply_relu=False, tm=tm, tk=tk)
    # Padded rows hold relu(bias) garbage; this slice must stay.
    return out[:n, :out_c]


def init_params(key, in_channels, hidden_channels, out_channels):
    ks = jax.random.split(key, 6)

    def glorot(k, fan_in, fan_out):
        scale = jnp.sqrt(6.0 / (fan_in + fan_out))
        return jax.random.uniform(k, (fan_in, fan_out), jnp.float32, -scale, scale)

    return {
        # SAGEConv1: lin_l (aggregated neighbors, with bias) and lin_r (root, no bias)
        "w1l": glorot(ks[0], in_channels, hidden_channels),
        "w1r": glorot(ks[1], in_channels, hidden_channels),
        "b1":  jnp.zeros((1, hidden_channels), jnp.float32),
        # SAGEConv2
        "w2l": glorot(ks[2], hidden_channels, out_channels),
        "w2r": glorot(ks[3], hidden_channels, out_channels),
        "b2":  jnp.zeros((1, out_channels), jnp.float32),
    }


def _reference(x, edge_index, params):
    """Pure-JAX f32 reference of the module's forward pass (eval mode)."""
    n = x.shape[0]
    src, dst = edge_index[0], edge_index[1]
    adj = jnp.zeros((n, n), jnp.float32).at[dst, src].add(1.0)
    deg = jnp.sum(adj, axis=1, keepdims=True)
    a = adj / jnp.maximum(deg, 1.0)
    h = jnp.dot(a, x) @ params["w1l"] + x @ params["w1r"] + params["b1"].reshape(1, -1)
    h = jnp.maximum(h, 0.0)
    return jnp.dot(a, h) @ params["w2l"] + h @ params["w2r"] + params["b2"].reshape(1, -1)


if __name__ == "__main__":
    key = jax.random.PRNGKey(0)
    k_x, k_e, k_p = jax.random.split(key, 3)

    N, E = 16, 40                      # nodes, edges
    IN_C, HID_C, OUT_C = 8, 32, 4      # in_channels, hidden_channels, out_channels

    x = jax.random.normal(k_x, (N, IN_C), jnp.float32)
    edge_index = jax.random.randint(k_e, (2, E), 0, N, dtype=jnp.int32)
    params = init_params(k_p, IN_C, HID_C, OUT_C)

    out = graph_token_classifier(x, edge_index, params)
    jax.block_until_ready(out)

    assert out.shape == (N, OUT_C) and out.dtype == jnp.float32

    ref = _reference(x, edge_index, params)
    max_err = float(jnp.max(jnp.abs(out - ref)))
    assert max_err < 5e-2, f"max abs error {max_err} too large"
    print("KERNEL_OK")
</pallas_src>

<mosaic_0001>
module attributes {stable_mosaic.version = 11 : i64} {
  func.func @_sage_layer_kernel(%arg0: i32, %arg1: i32, %arg2: memref<128x128xbf16, #tpu.memory_space<vmem>>, %arg3: memref<128x128xbf16, #tpu.memory_space<vmem>>, %arg4: memref<128x1xf32, #tpu.memory_space<vmem>>, %arg5: memref<128x128xbf16, #tpu.memory_space<vmem>>, %arg6: memref<128x128xbf16, #tpu.memory_space<vmem>>, %arg7: memref<1x128xf32, #tpu.memory_space<vmem>>, %arg8: memref<128x128xbf16, #tpu.memory_space<vmem>>, %arg9: memref<128x128xf32, #tpu.memory_space<vmem>>) attributes {dimension_semantics = [#tpu.dimension_semantics<parallel>, #tpu.dimension_semantics<arbitrary>], iteration_bounds = array<i64: 1, 1>, scalar_prefetch = 0 : i64, scratch_operands = 1 : i64, tpu.core_type = #tpu.core_type<tc>, window_params = [{transform_indices = @transform_0, window_bounds = array<i64: 128, 128>}, {pipeline_mode = #tpu.pipeline_mode<synchronous>, transform_indices = @transform_1, window_bounds = array<i64: 128, 128>}, {transform_indices = @transform_2, window_bounds = array<i64: 128, 1>}, {pipeline_mode = #tpu.pipeline_mode<synchronous>, transform_indices = @transform_3, window_bounds = array<i64: 128, 128>}, {pipeline_mode = #tpu.pipeline_mode<synchronous>, transform_indices = @transform_4, window_bounds = array<i64: 128, 128>}, {pipeline_mode = #tpu.pipeline_mode<synchronous>, transform_indices = @transform_5, window_bounds = array<i64: 1, 128>}, {transform_indices = @transform_6, window_bounds = array<i64: 128, 128>}]} {
    %c128_i32 = arith.constant 128 : i32
    %0 = arith.muli %arg1, %c128_i32 : i32
    %1 = tpu.assume_multiple %0, 128 : i32
    %2 = arith.index_cast %1 : i32 to index
    %c0 = arith.constant 0 : index
    %3 = vector.load %arg3[%2, %c0] : memref<128x128xbf16, #tpu.memory_space<vmem>>, vector<128x128xbf16>
    %c0_0 = arith.constant 0 : index
    %c0_1 = arith.constant 0 : index
    %4 = vector.load %arg2[%c0_0, %c0_1] : memref<128x128xbf16, #tpu.memory_space<vmem>>, vector<128x128xbf16>
    %cst = arith.constant dense<0.000000e+00> : vector<128x128xf32>
    %5 = tpu.matmul %4, %3, %cst {dimension_numbers = #tpu.dot_dimension_numbers<[1], [0], [0], [1], [0, 0, 1, 1], [], []>} : vector<128x128xbf16>, vector<128x128xbf16>, vector<128x128xf32> -> vector<128x128xf32>
    %c0_i32 = arith.constant 0 : i32
    %6 = arith.cmpi eq, %arg1, %c0_i32 : i32
    %7 = arith.extui %6 : i1 to i32
    %c0_i32_2 = arith.constant 0 : i32
    %8 = arith.cmpi ne, %7, %c0_i32_2 : i32
    scf.if %8 {
      %c0_7 = arith.constant 0 : index
      %c0_8 = arith.constant 0 : index
      %15 = vector.load %arg9[%c0_7, %c0_8] : memref<128x128xf32, #tpu.memory_space<vmem>>, vector<128x128xf32>
      tpu.vector_store %arg9[%c0_7, %c0_8], %5 {strides = array<i32>} : memref<128x128xf32, #tpu.memory_space<vmem>>, vector<128x128xf32>,
    } else {
    }
    %c0_i32_3 = arith.constant 0 : i32
    %9 = arith.cmpi sgt, %arg1, %c0_i32_3 : i32
    %10 = arith.extui %9 : i1 to i32
    %c0_i32_4 = arith.constant 0 : i32
    %11 = arith.cmpi ne, %10, %c0_i32_4 : i32
    scf.if %11 {
      %c0_7 = arith.constant 0 : index
      %c0_8 = arith.constant 0 : index
      %15 = vector.load %arg9[%c0_7, %c0_8] : memref<128x128xf32, #tpu.memory_space<vmem>>, vector<128x128xf32>
      %16 = arith.addf %15, %5 : vector<128x128xf32>
      %c0_9 = arith.constant 0 : index
      %c0_10 = arith.constant 0 : index
      %17 = vector.load %arg9[%c0_9, %c0_10] : memref<128x128xf32, #tpu.memory_space<vmem>>, vector<128x128xf32>
      tpu.vector_store %arg9[%c0_9, %c0_10], %16 {strides = array<i32>} : memref<128x128xf32, #tpu.memory_space<vmem>>, vector<128x128xf32>,
    } else {
    }
    %c0_i32_5 = arith.constant 0 : i32
    %12 = arith.cmpi eq, %arg1, %c0_i32_5 : i32
    %13 = arith.extui %12 : i1 to i32
    %c0_i32_6 = arith.constant 0 : i32
    %14 = arith.cmpi ne, %13, %c0_i32_6 : i32
    scf.if %14 {
      %c128_i32_7 = arith.constant 128 : i32
      %15 = arith.muli %arg0, %c128_i32_7 : i32
      %16 = tpu.assume_multiple %15, 128 : i32
      %17 = arith.index_cast %16 : i32 to index
      %c0_8 = arith.constant 0 : index
      %18 = vector.load %arg3[%17, %c0_8] : memref<128x128xbf16, #tpu.memory_space<vmem>>, vector<128x128xbf16>
      %c0_9 = arith.constant 0 : index
      %c0_10 = arith.constant 0 : index
      %19 = vector.load %arg9[%c0_9, %c0_10] : memref<128x128xf32, #tpu.memory_space<vmem>>, vector<128x128xf32>
      %c0_11 = arith.constant 0 : index
      %c0_12 = arith.constant 0 : index
      %20 = vector.load %arg4[%c0_11, %c0_12] : memref<128x1xf32, #tpu.memory_space<vmem>>, vector<128x1xf32>
      %21 = vector.broadcast %20 : vector<128x1xf32> to vector<128x128xf32>
      %22 = arith.mulf %19, %21 : vector<128x128xf32>
      %23 = arith.truncf %22 : vector<128x128xf32> to vector<128x128xbf16>
      %c0_13 = arith.constant 0 : index
      %c0_14 = arith.constant 0 : index
      %24 = vector.load %arg5[%c0_13, %c0_14] : memref<128x128xbf16, #tpu.memory_space<vmem>>, vector<128x128xbf16>
      %cst_15 = arith.constant dense<0.000000e+00> : vector<128x128xf32>
      %25 = tpu.matmul %23, %24, %cst_15 {dimension_numbers = #tpu.dot_dimension_numbers<[1], [0], [0], [1], [0, 0, 1, 1], [], []>} : vector<128x128xbf16>, vector<128x128xbf16>, vector<128x128xf32> -> vector<128x128xf32>
      %c0_16 = arith.constant 0 : index
      %c0_17 = arith.constant 0 : index
      %26 = vector.load %arg6[%c0_16, %c0_17] : memref<128x128xbf16, #tpu.memory_space<vmem>>, vector<128x128xbf16>
      %cst_18 = arith.constant dense<0.000000e+00> : vector<128x128xf32>
      %27 = tpu.matmul %18, %26, %cst_18 {dimension_numbers = #tpu.dot_dimension_numbers<[1], [0], [0], [1], [0, 0, 1, 1], [], []>} : vector<128x128xbf16>, vector<128x128xbf16>, vector<128x128xf32> -> vector<128x128xf32>
      %28 = arith.addf %25, %27 : vector<128x128xf32>
      %c0_19 = arith.constant 0 : index
      %c0_20 = arith.constant 0 : index
      %29 = vector.load %arg7[%c0_19, %c0_20] : memref<1x128xf32, #tpu.memory_space<vmem>>, vector<1x128xf32>
      %30 = vector.broadcast %29 : vector<1x128xf32> to vector<128x128xf32>
      %31 = arith.addf %28, %30 : vector<128x128xf32>
      %cst_21 = arith.constant 0.000000e+00 : f32
      %32 = vector.broadcast %cst_21 : f32 to vector<128x128xf32>
      %33 = arith.maximumf %31, %32 : vector<128x128xf32>
      %34 = arith.truncf %33 : vector<128x128xf32> to vector<128x128xbf16>
      %c0_22 = arith.constant 0 : index
      %c0_23 = arith.constant 0 : index
      %35 = vector.load %arg8[%c0_22, %c0_23] : memref<128x128xbf16, #tpu.memory_space<vmem>>, vector<128x128xbf16>
      tpu.vector_store %arg8[%c0_22, %c0_23], %34 {strides = array<i32>} : memref<128x128xbf16, #tpu.memory_space<vmem>>, vector<128x128xbf16>,
    } else {
    }
    return
  }
  func.func @transform_0(%arg0: i32, %arg1: i32) -> (i32, i32) {
    %c0_i32 = arith.constant 0 : i32
    return %arg0, %arg1 : i32, i32
  }
  func.func @transform_1(%arg0: i32, %arg1: i32) -> (i32, i32) {
    %c0_i32 = arith.constant 0 : i32
    %c0_i32_0 = arith.constant 0 : i32
    %c0_i32_1 = arith.constant 0 : i32
    return %c0_i32, %c0_i32_0 : i32, i32
  }
  func.func @transform_2(%arg0: i32, %arg1: i32) -> (i32, i32) {
    %c0_i32 = arith.constant 0 : i32
    %c0_i32_0 = arith.constant 0 : i32
    return %arg0, %c0_i32 : i32, i32
  }
  func.func @transform_3(%arg0: i32, %arg1: i32) -> (i32, i32) {
    %c0_i32 = arith.constant 0 : i32
    %c0_i32_0 = arith.constant 0 : i32
    %c0_i32_1 = arith.constant 0 : i32
    return %c0_i32, %c0_i32_0 : i32, i32
  }
  func.func @transform_4(%arg0: i32, %arg1: i32) -> (i32, i32) {
    %c0_i32 = arith.constant 0 : i32
    %c0_i32_0 = arith.constant 0 : i32
    %c0_i32_1 = arith.constant 0 : i32
    return %c0_i32, %c0_i32_0 : i32, i32
  }
  func.func @transform_5(%arg0: i32, %arg1: i32) -> (i32, i32) {
    %c0_i32 = arith.constant 0 : i32
    %c0_i32_0 = arith.constant 0 : i32
    %c0_i32_1 = arith.constant 0 : i32
    return %c0_i32, %c0_i32_0 : i32, i32
  }
  func.func @transform_6(%arg0: i32, %arg1: i32) -> (i32, i32) {
    %c0_i32 = arith.constant 0 : i32
    %c0_i32_0 = arith.constant 0 : i32
    return %arg0, %c0_i32 : i32, i32
  }
}

</mosaic_0001>

<bundles_post_ra>
// kernel: tpu_custom_call.1
= control target key start
LH: loop header
LB: loop body
LE: loop exit
PB: predicated region body
PF: predicated region fallthrough
CT: control target
= control target key end

     0   :  { %11 = vsyncpa [#allocation4], 0  ;;  %s1626_s0 = inlined_call_operand.vmem [shape: bf16[128,128], index: 0, kind: input, shape index: {}]   ;;  %s1627_s1 = inlined_call_operand.vmem [shape: bf16[128,128], index: 1, kind: input, shape index: {}]   ;;  %s1628_s2 = inlined_call_operand.vmem [shape: f32[128,1], index: 2, kind: input, shape index: {}]   ;;  %s1629_s3 = inlined_call_operand.hbm [shape: bf16[128,128], index: 3, kind: input, shape index: {}]   ;;  %s1630_s4 = inlined_call_operand.hbm [shape: bf16[128,128], index: 4, kind: input, shape index: {}]   ;;  %s1631_s5 = inlined_call_operand.vmem [shape: f32[1,128], index: 5, kind: input, shape index: {}]   ;;  %s1632_s6 = inlined_call_operand.hbm [shape: bf16[128,128], index: 6, kind: output, shape index: {}]  }
   0x1   :  { %12 = vsyncpa [#allocation7], 0 }
   0x2   :  { %13 = vsyncpa [#allocation5], 0  ;;  %s1420_s21 = smov [#allocation3]  }
   0x3   :  { %s25_s22 = sshll.u32 %s1420_s21, 4  ;;  %s26_s22 = int_to_ptr.vmem [resolvable:$true] %s25_s22 }
   0x4   :  { %s1362_s23 = scalar_lea.vmem %s26_s22, 1024  ;;  %p1367_p1 = scmp.lt.s32.totalorder %s26_s22, %s26_s22 }
   0x5   :  { %p1363_p0 = scmp.ne.s32.totalorder %s26_s22, %s1362_s23  ;;  %p1368_p2 = scmp.lt.s32.totalorder %s1362_s23, %s1362_s23 }
   0x7   :  { %p1369_p3 = por %p1368_p2, %p1367_p1 }
   0x9   :  { %p1370_p4 = pnand %p1369_p3, %p1363_p0 }
   0xb   :  { %1373 = shalt.err (!%p1370_p4)
}
   0xc   :  { %s1421_s24 = smov 64   ;;  %s1422_s25 = smov 4  }
   0xd   :  { %31 = dma.hbm_to_vmem [thread:$0]  %s1629_s3, 1024, %s26_s22, [#allocation4], %s1421_s24, %s1421_s24, %s1422_s25  }
   0xe   :  { %s1423_s28 = smov [#allocation6]  }
   0xf   :  { %s37_s29 = sshll.u32 %s1423_s28, 4  ;;  %s38_s29 = int_to_ptr.vmem [resolvable:$true] %s37_s29 }
  0x10   :  { %s1382_s30 = scalar_lea.vmem %s38_s29, 1024  ;;  %p1387_p6 = scmp.lt.s32.totalorder %s38_s29, %s38_s29 }
  0x11   :  { %p1383_p5 = scmp.ne.s32.totalorder %s38_s29, %s1382_s30  ;;  %p1388_p7 = scmp.lt.s32.totalorder %s1382_s30, %s1382_s30 }
  0x13   :  { %p1389_p8 = por %p1388_p7, %p1387_p6 }
  0x15   :  { %p1390_p9 = pnand %p1389_p8, %p1383_p5 }
  0x17   :  { %1393 = shalt.err (!%p1390_p9)
}
  0x18   :  { %43 = dma.hbm_to_vmem [thread:$0]  %s1630_s4, 1024, %s38_s29, [#allocation7], %s1421_s24, %s1421_s24, %s1422_s25  }
  0x19   :  { %1414 = dma.done.wait [#allocation4], 1024  }
  0x1a   :  { %1415 = vsyncadd [#allocation4], 4294966272 }
  0x1b   :  { %1416 = dma.done.wait [#allocation7], 1024  }
  0x1c   :  { %1417 = vsyncadd [#allocation7], 4294966272  ;;  %v1424_v0 = vmov 0   ;;  %v1314_v1 = vld [vmem:[%s1627_s1 + $0x38] sm:$0xff]   ;;  %v1315_v2 = vld [vmem:[%s1627_s1 + $0x30] sm:$0xff]  }
  0x1d   :  { %1313 = vset.pattern.permute.xlu1 %v1424_v0  ;;  %1312 = vset.pattern.permute.xlu0 %v1424_v0  ;;  %v1316_v3 = vld [vmem:[%s1627_s1 + $0x28] sm:$0xff]   ;;  %v1317_v4 = vld [vmem:[%s1627_s1 + $0x20] sm:$0xff]   ;;  %v1318_v6 = vld [vmem:[%s1627_s1 + $0x18] sm:$0xff]  }
  0x1e   :  { %1194 = vmatprep.subr.bf16.mxu0 %v1314_v1  ;;  %v1322_v5 = vld [vmem:[%s1626_s0] sm:$0xff]   ;;  %v1319_v7 = vld [vmem:[%s1627_s1 + $0x10] sm:$0xff]   ;;  %v404_v10 = vld [vmem:[%s1628_s2 + $0x48] sm:$0xff] }
  0x1f   :  { %1195 = vmatpush3.bf16.msra.mxu0 %v1314_v1  ;;  %1210 = vmatprep.mubr.bf16.mxu0 %v1322_v5  ;;  %v403_v8 = vld [vmem:[%s1628_s2 + $0x40] sm:$0xff]  ;;  %v396_v11 = vld [vmem:[%s1628_s2 + $0x8] sm:$0xff]  ;;  %v398_v13 = vld [vmem:[%s1628_s2 + $0x18] sm:$0xff] }
  0x20   :  { %1196 = vmatprep.subr.bf16.mxu0 %v1315_v2  ;;  %v395_v9 = vld [vmem:[%s1628_s2] sm:$0xff]  ;;  %453 = vperm.xlu1 %1313, %v403_v8   ;;  %v1320_v12 = vld [vmem:[%s1627_s1 + $0x8] sm:$0xff]   ;;  %v397_v14 = vld [vmem:[%s1628_s2 + $0x10] sm:$0xff] }
  0x21   :  { %413 = vperm.xlu0 %1312, %v395_v9   ;;  %v1330_v15 = vld [vmem:[#allocation6 + $0x38] sm:$0xff]   ;;  %v1331_v16 = vld [vmem:[#allocation6 + $0x30] sm:$0xff]   ;;  %v1321_v17 = vld [vmem:[%s1627_s1] sm:$0xff]  }
  0x22   :  { %1226 = vmatprep.subr.bf16.mxu1 %v1330_v15  ;;  %v406_v18 = vld [vmem:[%s1628_s2 + $0x58] sm:$0xff]  ;;  %v405_v19 = vld [vmem:[%s1628_s2 + $0x50] sm:$0xff]  ;;  %v1332_v20 = vld [vmem:[#allocation6 + $0x28] sm:$0xff]  }
  0x23   :  { %1197 = vmatpush3.bf16.msra.mxu0 %v1315_v2  ;;  %1227 = vmatpush3.bf16.msra.mxu1 %v1330_v15  ;;  %v1323_v21 = vld [vmem:[%s1626_s0 + $0x8] sm:$0xff]   ;;  %v1527_v22 = vld [vmem:[#allocation3 + $0x38] sm:$0xff]   ;;  %v1324_v23 = vld [vmem:[%s1626_s0 + $0x10] sm:$0xff]  }
  0x24   :  { %1198 = vmatprep.subr.bf16.mxu0 %v1316_v3  ;;  %458 = vperm.xlu1 %1313, %v404_v10   ;;  %v400_v24 = vld [vmem:[%s1628_s2 + $0x28] sm:$0xff]  ;;  %v399_v25 = vld [vmem:[%s1628_s2 + $0x20] sm:$0xff]  ;;  %v1338_v30 = vld [vmem:[#allocation3 + $0x30] sm:$0xff]  }
  0x25   :  { %418 = vperm.xlu0 %1312, %v396_v11   ;;  %1228 = vmatprep.subr.bf16.mxu1 %v1331_v16  ;;  %v1333_v26 = vld [vmem:[#allocation6 + $0x20] sm:$0xff]   ;;  %v408_v27 = vld [vmem:[%s1628_s2 + $0x68] sm:$0xff]  ;;  %v1334_v31 = vld [vmem:[#allocation6 + $0x18] sm:$0xff]  }
  0x26   :  { %v407_v28 = vld [vmem:[%s1628_s2 + $0x60] sm:$0xff]  ;;  %v1325_v32 = vld [vmem:[%s1626_s0 + $0x18] sm:$0xff]   ;;  %v401_v34 = vld [vmem:[%s1628_s2 + $0x30] sm:$0xff] }
  0x27   :  { %1199 = vmatpush3.bf16.msra.mxu0 %v1316_v3  ;;  %1229 = vmatpush3.bf16.msra.mxu1 %v1331_v16  ;;  %v1341_v29 = vld [vmem:[%s1627_s1] sm:$0xff]   ;;  %v402_v33 = vld [vmem:[%s1628_s2 + $0x38] sm:$0xff]  ;;  %v1335_v36 = vld [vmem:[#allocation6 + $0x10] sm:$0xff]  }
  0x28   :  { %1200 = vmatprep.subr.bf16.mxu0 %v1317_v4  ;;  %428 = vperm.xlu1 %1313, %v398_v13   ;;  %v1326_v35 = vld [vmem:[%s1626_s0 + $0x20] sm:$0xff]   ;;  %v1340_v37 = vld [vmem:[#allocation3 + $0x28] sm:$0xff]   ;;  %v410_v38 = vld [vmem:[%s1628_s2 + $0x78] sm:$0xff] }
  0x29   :  { %423 = vperm.xlu0 %1312, %v397_v14   ;;  %1230 = vmatprep.subr.bf16.mxu1 %v1332_v20  ;;  %v409_v39 = vld [vmem:[%s1628_s2 + $0x70] sm:$0xff]  ;;  %v1337_v40 = vld [vmem:[#allocation6 + $0x8] sm:$0xff]   ;;  %v1343_v41 = vld [vmem:[#allocation3 + $0x20] sm:$0xff]  }
  0x2a   :  { %1242 = vmatprep.mubr.bf16.mxu1 %v1341_v29  ;;  %v1327_v42 = vld [vmem:[%s1626_s0 + $0x28] sm:$0xff]   ;;  %v1328_v43 = vld [vmem:[%s1626_s0 + $0x30] sm:$0xff]   ;;  %v1339_v44 = vld [vmem:[#allocation6] sm:$0xff]  }
  0x2b   :  { %1201 = vmatpush3.bf16.msra.mxu0 %v1317_v4  ;;  %1231 = vmatpush3.bf16.msra.mxu1 %v1332_v20  ;;  %v1344_v45 = vld [vmem:[#allocation3 + $0x18] sm:$0xff]   ;;  %v1342_v46 = vld [vmem:[%s1627_s1 + $0x8] sm:$0xff]   ;;  %v1345_v48 = vld [vmem:[%s1627_s1 + $0x10] sm:$0xff]  }
  0x2c   :  { %1202 = vmatprep.subr.bf16.mxu0 %v1318_v6  ;;  %468 = vperm.xlu1 %1313, %v406_v18   ;;  %v1329_v47 = vld [vmem:[%s1626_s0 + $0x38] sm:$0xff]   ;;  %v1347_v50 = vld [vmem:[#allocation3 + $0x10] sm:$0xff]   ;;  %v1348_v51 = vld [vmem:[#allocation3 + $0x8] sm:$0xff]  }
  0x2d   :  { %463 = vperm.xlu0 %1312, %v405_v19   ;;  %1232 = vmatprep.subr.bf16.mxu1 %v1333_v26  ;;  %v1346_v49 = vld [vmem:[%s1627_s1 + $0x18] sm:$0xff]   ;;  %v1349_v52 = vld [vmem:[%s1627_s1 + $0x20] sm:$0xff]   ;;  %v1350_v53 = vld [vmem:[%s1627_s1 + $0x28] sm:$0xff]  }
  0x2e   :  { %v1351_v54 = vld [vmem:[#allocation3] sm:$0xff]   ;;  %v1352_v55 = vld [vmem:[%s1627_s1 + $0x30] sm:$0xff]   ;;  %v1353_v56 = vld [vmem:[%s1627_s1 + $0x38] sm:$0xff]  }
  0x2f   :  { %1203 = vmatpush3.bf16.msra.mxu0 %v1318_v6  ;;  %1233 = vmatpush3.bf16.msra.mxu1 %v1333_v26 }
  0x30   :  { %1204 = vmatprep.subr.bf16.mxu0 %v1319_v7  ;;  %438 = vperm.xlu1 %1313, %v400_v24  }
  0x31   :  { %433 = vperm.xlu0 %1312, %v399_v25   ;;  %1234 = vmatprep.subr.bf16.mxu1 %v1334_v31 }
  0x33   :  { %1205 = vmatpush3.bf16.msra.mxu0 %v1319_v7  ;;  %1235 = vmatpush3.bf16.msra.mxu1 %v1334_v31 }
  0x34   :  { %1206 = vmatprep.subr.bf16.mxu0 %v1320_v12  ;;  %478 = vperm.xlu1 %1313, %v408_v27  }
  0x35   :  { %473 = vperm.xlu0 %1312, %v407_v28   ;;  %1236 = vmatprep.subr.bf16.mxu1 %v1335_v36 }
  0x37   :  { %1207 = vmatpush3.bf16.msra.mxu0 %v1320_v12  ;;  %1237 = vmatpush3.bf16.msra.mxu1 %v1335_v36 }
  0x38   :  { %1208 = vmatprep.subr.bf16.mxu0 %v1321_v17  ;;  %448 = vperm.xlu1 %1313, %v402_v33  }
  0x39   :  { %443 = vperm.xlu0 %1312, %v401_v34   ;;  %1238 = vmatprep.subr.bf16.mxu1 %v1337_v40 }
  0x3b   :  { %1209 = vmatpush3.bf16.msra.mxu0 %v1321_v17  ;;  %1239 = vmatpush3.bf16.msra.mxu1 %v1337_v40 }
  0x3c   :  { %1258 = vmatprep.subr.bf16.mxu0 %v1527_v22  ;;  %488 = vperm.xlu1 %1313, %v410_v38  }
  0x3d   :  { %483 = vperm.xlu0 %1312, %v409_v39   ;;  %1240 = vmatprep.subr.bf16.mxu1 %v1339_v44 }
  0x3e   :  { %1211 = vmatmul.mubr.bf16.vlgmr.msra.gmra.mxu0 %v1323_v21 }
  0x3f   :  { %1214 = vmatprep.mubr.bf16.mxu0 %v1324_v23  ;;  %1259 = vmatpush3.bf16.msra.mxu0 %v1527_v22 }
  0x40   :  { %1260 = vmatprep.subr.bf16.mxu0 %v1338_v30  ;;  %1241 = vmatpush3.bf16.msra.mxu1 %v1339_v44 }
  0x41   :  { %1290 = vmatprep.subr.bf16.mxu1 %v1527_v22 }
  0x43   :  { %1261 = vmatpush3.bf16.msra.mxu0 %v1338_v30  ;;  %1243 = vmatmul.mubr.bf16.vlgmr.msra.gmra.mxu1 %v1342_v46 }
  0x44   :  { %1262 = vmatprep.subr.bf16.mxu0 %v1340_v37  ;;  %1298 = vmatpush3.bf16.msra.mxu1 %v1527_v22 }
  0x45   :  { %1246 = vmatprep.mubr.bf16.mxu1 %v1345_v48  ;;  %1291 = vmatprep.subr.bf16.mxu1 %v1338_v30 }
  0x46   :  { %1215 = vmatmul.mubr.bf16.gmra.mxu0 %v1325_v32 }
  0x47   :  { %1218 = vmatprep.mubr.bf16.mxu0 %v1326_v35  ;;  %1263 = vmatpush3.bf16.msra.mxu0 %v1340_v37 }
  0x48   :  { %1264 = vmatprep.subr.bf16.mxu0 %v1343_v41  ;;  %1299 = vmatpush3.bf16.msra.mxu1 %v1338_v30 }
  0x49   :  { %1292 = vmatprep.subr.bf16.mxu1 %v1340_v37 }
  0x4b   :  { %1265 = vmatpush3.bf16.msra.mxu0 %v1343_v41  ;;  %1247 = vmatmul.mubr.bf16.gmra.mxu1 %v1346_v49 }
  0x4c   :  { %1266 = vmatprep.subr.bf16.mxu0 %v1344_v45  ;;  %1300 = vmatpush3.bf16.msra.mxu1 %v1340_v37 }
  0x4d   :  { %1293 = vmatprep.subr.bf16.mxu1 %v1343_v41  ;;  %1250 = vmatprep.mubr.bf16.mxu1 %v1349_v52 }
  0x4e   :  { %1219 = vmatmul.mubr.bf16.gmra.mxu0 %v1327_v42 }
  0x4f   :  { %1222 = vmatprep.mubr.bf16.mxu0 %v1328_v43  ;;  %1267 = vmatpush3.bf16.msra.mxu0 %v1344_v45 }
  0x50   :  { %1301 = vmatpush3.bf16.msra.mxu1 %v1343_v41  ;;  %1268 = vmatprep.subr.bf16.mxu0 %v1347_v50 }
  0x51   :  { %1294 = vmatprep.subr.bf16.mxu1 %v1344_v45 }
  0x53   :  { %1269 = vmatpush3.bf16.msra.mxu0 %v1347_v50  ;;  %1251 = vmatmul.mubr.bf16.gmra.mxu1 %v1350_v53 }
  0x54   :  { %1302 = vmatpush3.bf16.msra.mxu1 %v1344_v45  ;;  %1270 = vmatprep.subr.bf16.mxu0 %v1348_v51 }
  0x55   :  { %1295 = vmatprep.subr.bf16.mxu1 %v1347_v50  ;;  %1254 = vmatprep.mubr.bf16.mxu1 %v1352_v55 }
  0x56   :  { %1223 = vmatmul.mubr.bf16.gmra.mxu0 %v1329_v47 }
  0x57   :  { %1271 = vmatpush3.bf16.msra.mxu0 %v1348_v51 }
  0x58   :  { %1303 = vmatpush3.bf16.msra.mxu1 %v1347_v50  ;;  %1272 = vmatprep.subr.bf16.mxu0 %v1351_v54 }
  0x59   :  { %1296 = vmatprep.subr.bf16.mxu1 %v1348_v51 }
  0x5b   :  { %1273 = vmatpush3.bf16.msra.mxu0 %v1351_v54  ;;  %1255 = vmatmul.mubr.bf16.gmra.mxu1 %v1353_v56 }
  0x5c   :  { %1304 = vmatpush3.bf16.msra.mxu1 %v1348_v51 }
  0x5d   :  { %1297 = vmatprep.subr.bf16.mxu1 %v1351_v54 }
  0x60   :  { %1305 = vmatpush3.bf16.msra.mxu1 %v1351_v54 }
  0x9b   :  { %v454_v57 = vpop.permute.xlu1 %453 }
  0x9c   :  { %v414_v58 = vpop.permute.xlu0 %413 }
  0x9f   :  { %v459_v59 = vpop.permute.xlu1 %458 }
  0xa0   :  { %v419_v60 = vpop.permute.xlu0 %418 }
  0xa3   :  { %v429_v61 = vpop.permute.xlu1 %428 }
  0xa4   :  { %v424_v62 = vpop.permute.xlu0 %423 }
  0xa7   :  { %v469_v63 = vpop.permute.xlu1 %468 }
  0xa8   :  { %v464_v0 = vpop.permute.xlu0 %463 }
  0xab   :  { %v439_v2 = vpop.permute.xlu1 %438 }
  0xac   :  { %v434_v4 = vpop.permute.xlu0 %433 }
  0xaf   :  { %v479_v8 = vpop.permute.xlu1 %478 }
  0xb0   :  { %v474_v13 = vpop.permute.xlu0 %473 }
  0xb3   :  { %v449_v18 = vpop.permute.xlu1 %448 }
  0xb4   :  { %v444_v21 = vpop.permute.xlu0 %443 }
  0xb7   :  { %v489_v40 = vpop.permute.xlu1 %488 }
  0xb8   :  { %v484_v43 = vpop.permute.xlu0 %483 }
  0xfe   :  { %v1212_v1 = vpop.f32.mrf.mxu0 }
  0xff   :  { %v493_v11 = vmul.f32 %v1212_v1, %v424_v62 }
 0x100   :  { %v220_v3 = vpop.f32.mrf.mxu0 }
 0x101   :  { %v491_v9 = vmul.f32 %v414_v58, %v220_v3 }
 0x102   :  { %v1213_v5 = vpop.f32.mrf.mxu0 }
 0x103   :  { %v494_v6 = vmul.f32 %v1213_v5, %v429_v61  ;;  %v1244_v49 = vpop.f32.mrf.mxu1 }
 0x104   :  { %v223_v7 = vpop.f32.mrf.mxu0 }
 0x105   :  { %v492_v10 = vmul.f32 %v419_v60, %v223_v7  ;;  %v508_v15 = vpack.c.bf16 %v494_v6, %v493_v11  ;;  %v677_v50 = vpop.f32.mrf.mxu1 }
 0x106   :  { %v1216_v12 = vpop.f32.mrf.mxu0 }
 0x107   :  { %v507_v14 = vpack.c.bf16 %v492_v10, %v491_v9  ;;  %v497_v24 = vmul.f32 %v1216_v12, %v444_v21  ;;  %v1245_v51 = vpop.f32.mrf.mxu1 }
 0x108   :  { %v236_v16 = vpop.f32.mrf.mxu0 }
 0x109   :  { %1274 = vmatprep.mubr.bf16.mxu0 %v507_v14  ;;  %v495_v22 = vmul.f32 %v434_v4, %v236_v16  ;;  %v680_v52 = vpop.f32.mrf.mxu1 }
 0x10a   :  { %v1217_v17 = vpop.f32.mrf.mxu0  ;;  %1275 = vmatmul.mubr.bf16.vlgmr.msra.gmra.mxu0 %v508_v15 }
 0x10b   :  { %v498_v19 = vmul.f32 %v1217_v17, %v449_v18  ;;  %v1248_v53 = vpop.f32.mrf.mxu1 }
 0x10c   :  { %v239_v20 = vpop.f32.mrf.mxu0 }
 0x10d   :  { %v496_v23 = vmul.f32 %v439_v2, %v239_v20  ;;  %v510_v27 = vpack.c.bf16 %v498_v19, %v497_v24  ;;  %v693_v54 = vpop.f32.mrf.mxu1 }
 0x10e   :  { %v1220_v25 = vpop.f32.mrf.mxu0 }
 0x10f   :  { %v509_v26 = vpack.c.bf16 %v496_v23, %v495_v22  ;;  %v501_v34 = vmul.f32 %v1220_v25, %v464_v0  ;;  %v1249_v55 = vpop.f32.mrf.mxu1 }
 0x110   :  { %v252_v28 = vpop.f32.mrf.mxu0 }
 0x111   :  { %1278 = vmatprep.mubr.bf16.mxu0 %v509_v26  ;;  %v499_v32 = vmul.f32 %v454_v57, %v252_v28  ;;  %v696_v56 = vpop.f32.mrf.mxu1 }
 0x112   :  { %v1221_v29 = vpop.f32.mrf.mxu0  ;;  %1279 = vmatmul.mubr.bf16.gmra.mxu0 %v510_v27 }
 0x113   :  { %v502_v30 = vmul.f32 %v1221_v29, %v469_v63  ;;  %v1252_v57 = vpop.f32.mrf.mxu1  ;;  %v1602_v63 = vld [vmem:[%s1631_s5] ss:$0 sm:$0xff]  ;;  %s1425_s5 = smov [#allocation8]  }
 0x114   :  { %v255_v31 = vpop.f32.mrf.mxu0  ;;  %s1009_s14 = sshll.u32 %s1425_s5, 4  ;;  %s1010_s14 = int_to_ptr.vmem [resolvable:$true] %s1009_s14 }
 0x115   :  { %v500_v33 = vmul.f32 %v459_v59, %v255_v31  ;;  %v512_v37 = vpack.c.bf16 %v502_v30, %v501_v34  ;;  %v709_v58 = vpop.f32.mrf.mxu1  ;;  %s1394_s15 = scalar_lea.vmem %s1010_s14, 1024  ;;  %p1399_p11 = scmp.lt.s32.totalorder %s1010_s14, %s1010_s14 }
 0x116   :  { %v1224_v35 = vpop.f32.mrf.mxu0  ;;  %p1395_p10 = scmp.ne.s32.totalorder %s1010_s14, %s1394_s15  ;;  %p1400_p12 = scmp.lt.s32.totalorder %s1394_s15, %s1394_s15 }
 0x117   :  { %v511_v36 = vpack.c.bf16 %v500_v33, %v499_v32  ;;  %v505_v46 = vmul.f32 %v1224_v35, %v484_v43  ;;  %v1253_v59 = vpop.f32.mrf.mxu1 }
 0x118   :  { %v268_v38 = vpop.f32.mrf.mxu0  ;;  %p1401_p13 = por %p1400_p12, %p1399_p11 }
 0x119   :  { %1282 = vmatprep.mubr.bf16.mxu1 %v511_v36  ;;  %v503_v44 = vmul.f32 %v474_v13, %v268_v38  ;;  %v712_v60 = vpop.f32.mrf.mxu1 }
 0x11a   :  { %v1225_v39 = vpop.f32.mrf.mxu0  ;;  %1283 = vmatmul.mubr.bf16.vlgmr.msra.gmra.mxu1 %v512_v37  ;;  %p1402_p0 = pnand %p1401_p13, %p1395_p10 }
 0x11b   :  { %v506_v41 = vmul.f32 %v1225_v39, %v489_v40  ;;  %v1256_v0 = vpop.f32.mrf.mxu1 }
 0x11c   :  { %v271_v42 = vpop.f32.mrf.mxu0 }
 0x11d   :  { %v504_v45 = vmul.f32 %v479_v8, %v271_v42  ;;  %v514_v48 = vpack.c.bf16 %v506_v41, %v505_v46  ;;  %v725_v6 = vpop.f32.mrf.mxu1 }
 0x11f   :  { %v513_v47 = vpack.c.bf16 %v504_v45, %v503_v44  ;;  %v1257_v16 = vpop.f32.mrf.mxu1 }
 0x121   :  { %1286 = vmatprep.mubr.bf16.mxu1 %v513_v47  ;;  %v728_v26 = vpop.f32.mrf.mxu1 }
 0x122   :  { %1287 = vmatmul.mubr.bf16.gmra.mxu1 %v514_v48 }
 0x1ca   :  { %v1276_v61 = vpop.f32.mrf.mxu0 }
 0x1cb   :  { %v831_v62 = vadd.f32 %v1276_v61, %v1244_v49 }
 0x1cc   :  { %v822_v1 = vpop.f32.mrf.mxu0 }
 0x1cd   :  { %v823_v2 = vadd.f32 %v822_v1, %v677_v50  ;;  %v894_v4 = vadd.f32 %v1602_v63, %v831_v62 }
 0x1ce   :  { %v1277_v3 = vpop.f32.mrf.mxu0 }
 0x1cf   :  { %v834_v5 = vadd.f32 %v1277_v3, %v1245_v51  ;;  %v892_v8 = vadd.f32 %v1602_v63, %v823_v2  ;;  %v910_v12 = vmax.f32 %v894_v4, 0.0 }
 0x1d0   :  { %v825_v7 = vpop.f32.mrf.mxu0 }
 0x1d1   :  { %v895_v9 = vadd.f32 %v1602_v63, %v834_v5  ;;  %v826_v10 = vadd.f32 %v825_v7, %v680_v52  ;;  %v908_v18 = vmax.f32 %v892_v8, 0.0 }
 0x1d2   :  { %v1280_v11 = vpop.f32.mrf.mxu0 }
 0x1d3   :  { %v911_v13 = vmax.f32 %v895_v9, 0.0  ;;  %v893_v14 = vadd.f32 %v1602_v63, %v826_v10  ;;  %v847_v15 = vadd.f32 %v1280_v11, %v1248_v53 }
 0x1d4   :  { %v838_v17 = vpop.f32.mrf.mxu0 }
 0x1d5   :  { %v1107_v19 = vpack.c.bf16 %v911_v13, %v910_v12  ;;  %v909_v20 = vmax.f32 %v893_v14, 0.0  ;;  %v839_v21 = vadd.f32 %v838_v17, %v693_v54  ;;  %v898_v24 = vadd.f32 %v1602_v63, %v847_v15 }
 0x1d6   :  { %v1281_v22 = vpop.f32.mrf.mxu0 }
 0x1d7   :  { %1139 = vst [vmem:[#allocation8 + $0x8] sm:$0xff] %v1107_v19   ;;  %v1102_v23 = vpack.c.bf16 %v909_v20, %v908_v18  ;;  %v850_v25 = vadd.f32 %v1281_v22, %v1249_v55  ;;  %v896_v28 = vadd.f32 %v1602_v63, %v839_v21  ;;  %v914_v32 = vmax.f32 %v898_v24, 0.0 }
 0x1d8   :  { %v841_v27 = vpop.f32.mrf.mxu0 }
 0x1d9   :  { %1103 = vst [vmem:[#allocation8] sm:$0xff] %v1102_v23   ;;  %v899_v29 = vadd.f32 %v1602_v63, %v850_v25  ;;  %v842_v30 = vadd.f32 %v841_v27, %v696_v56  ;;  %v912_v37 = vmax.f32 %v896_v28, 0.0 }
 0x1da   :  { %v1284_v31 = vpop.f32.mrf.mxu1 }
 0x1db   :  { %v915_v33 = vmax.f32 %v899_v29, 0.0  ;;  %v897_v34 = vadd.f32 %v1602_v63, %v842_v30  ;;  %v863_v35 = vadd.f32 %v1284_v31, %v1252_v57 }
 0x1dc   :  { %v854_v36 = vpop.f32.mrf.mxu1 }
 0x1dd   :  { %v1117_v38 = vpack.c.bf16 %v915_v33, %v914_v32  ;;  %v913_v39 = vmax.f32 %v897_v34, 0.0  ;;  %v855_v40 = vadd.f32 %v854_v36, %v709_v58  ;;  %v902_v43 = vadd.f32 %v1602_v63, %v863_v35 }
 0x1de   :  { %v1285_v41 = vpop.f32.mrf.mxu1 }
 0x1df   :  { %1141 = vst [vmem:[#allocation8 + $0x18] sm:$0xff] %v1117_v38   ;;  %v1112_v42 = vpack.c.bf16 %v913_v39, %v912_v37  ;;  %v866_v44 = vadd.f32 %v1285_v41, %v1253_v59  ;;  %v900_v46 = vadd.f32 %v1602_v63, %v855_v40  ;;  %v918_v50 = vmax.f32 %v902_v43, 0.0 }
 0x1e0   :  { %v857_v45 = vpop.f32.mrf.mxu1 }
 0x1e1   :  { %1140 = vst [vmem:[#allocation8 + $0x10] sm:$0xff] %v1112_v42   ;;  %v903_v47 = vadd.f32 %v1602_v63, %v866_v44  ;;  %v858_v48 = vadd.f32 %v857_v45, %v712_v60  ;;  %v916_v55 = vmax.f32 %v900_v46, 0.0 }
 0x1e2   :  { %v1288_v49 = vpop.f32.mrf.mxu1 }
 0x1e3   :  { %v919_v51 = vmax.f32 %v903_v47, 0.0  ;;  %v901_v52 = vadd.f32 %v1602_v63, %v858_v48  ;;  %v879_v53 = vadd.f32 %v1288_v49, %v1256_v0 }
 0x1e4   :  { %v870_v54 = vpop.f32.mrf.mxu1 }
 0x1e5   :  { %v1127_v56 = vpack.c.bf16 %v919_v51, %v918_v50  ;;  %v917_v57 = vmax.f32 %v901_v52, 0.0  ;;  %v871_v58 = vadd.f32 %v870_v54, %v725_v6  ;;  %v906_v62 = vadd.f32 %v1602_v63, %v879_v53 }
 0x1e6   :  { %v1289_v61 = vpop.f32.mrf.mxu1 }
 0x1e7   :  { %1143 = vst [vmem:[#allocation8 + $0x28] sm:$0xff] %v1127_v56   ;;  %v1122_v59 = vpack.c.bf16 %v917_v57, %v916_v55  ;;  %v882_v1 = vadd.f32 %v1289_v61, %v1257_v16  ;;  %v904_v60 = vadd.f32 %v1602_v63, %v871_v58  ;;  %v922_v5 = vmax.f32 %v906_v62, 0.0 }
 0x1e8   :  { %v873_v2 = vpop.f32.mrf.mxu1 }
 0x1e9   :  { %1142 = vst [vmem:[#allocation8 + $0x20] sm:$0xff] %v1122_v59   ;;  %v907_v3 = vadd.f32 %v1602_v63, %v882_v1  ;;  %v874_v4 = vadd.f32 %v873_v2, %v728_v26  ;;  %v920_v6 = vmax.f32 %v904_v60, 0.0 }
 0x1eb   :  { %v923_v0 = vmax.f32 %v907_v3, 0.0  ;;  %v905_v7 = vadd.f32 %v1602_v63, %v874_v4 }
 0x1ed   :  { %v1137_v8 = vpack.c.bf16 %v923_v0, %v922_v5  ;;  %v921_v9 = vmax.f32 %v905_v7, 0.0 }
 0x1ef   :  { %1145 = vst [vmem:[#allocation8 + $0x38] sm:$0xff] %v1137_v8   ;;  %v1132_v10 = vpack.c.bf16 %v921_v9, %v920_v6 }
 0x1f1   :  { %1144 = vst [vmem:[#allocation8 + $0x30] sm:$0xff] %v1132_v10  }
 0x1f2   :  { %1405 = shalt.err (!%p1402_p0)
}
 0x1f3   :  { %1015 = dma.vmem_to_hbm [thread:$0]  %s1010_s14, 1024, %s1632_s6, [#allocation5], %s1421_s24, %s1421_s24, %s1422_s25  }
 0x1f4   :  { %1418 = dma.done.wait [#allocation5], 1024  }
 0x1f5   :  { %1419 = vsyncadd [#allocation5], 4294966272 }
 0x1f6   :  { %1019 = vsyncpa [#allocation4], 1 }
 0x1f7   :  { %1020 = vsyncpa [#allocation7], 1 }
 0x1f8   :  { %1021 = vsyncpa [#allocation5], 1 }

</bundles_post_ra>
